<compile_context>
chip_gen: v7x
topology: tpu7x:2x2x1
jax: 0.10.0
libtpu: 0.0.40
codegen_flags: <defaults>
</compile_context>

<pallas_src>
import functools
import math

import jax
import jax.numpy as jnp
from jax.experimental import pallas as pl
from jax.experimental.pallas import tpu as pltpu


def _layer_norm(x, gamma, beta, eps=1e-5):
    mu = jnp.mean(x, axis=-1, keepdims=True)
    var = jnp.mean((x - mu) * (x - mu), axis=-1, keepdims=True)
    return (x - mu) * jax.lax.rsqrt(var + eps) * gamma + beta


# --------------------- Pass 1: K/V projection (head-split, bf16) ---------------------

def kv_proj_kernel(x_ref, wk_ref, bk_ref, wv_ref, bv_ref, k_ref, v_ref, *, n_heads):
    D = x_ref.shape[2]
    H = n_heads
    E = D // H
    xb = x_ref[0].astype(jnp.bfloat16)                                        # (TKV, D)
    k = jnp.dot(xb, wk_ref[...], preferred_element_type=jnp.float32) + bk_ref[...]
    v = jnp.dot(xb, wv_ref[...], preferred_element_type=jnp.float32) + bv_ref[...]
    for h in range(H):                                                        # once per token, cold path
        k_ref[0, h] = k[:, h * E:(h + 1) * E].astype(jnp.bfloat16)
        v_ref[0, h] = v[:, h * E:(h + 1) * E].astype(jnp.bfloat16)


# --------------------- Pass 2: attention + FFN per q-tile ---------------------

def decoder_layer_kernel(
    x_ref,                                   # (1, TL, D) f32 (per q-tile)
    k_ref, v_ref,                            # (1, H, L, E) bf16 (constant across q-tiles)
    wq_ref, bq_ref, wo_ref, bo_ref,
    w1_ref, b1_ref, w2_ref, b2_ref,
    g1_ref, be1_ref, g2_ref, be2_ref,
    o_ref,                                   # (1, TL, D)
    *, n_heads, exp_dtype,
):
    D = x_ref.shape[2]
    H = n_heads
    E = D // H

    x_tile = x_ref[0]                                                         # (TL, D) f32

    # 1/sqrt(E) is already folded into wq/bq (prepare_params).
    q = jnp.dot(x_tile.astype(jnp.bfloat16), wq_ref[...],
                preferred_element_type=jnp.float32) + bq_ref[...]
    qh = jnp.stack([q[:, h * E:(h + 1) * E] for h in range(H)],
                   axis=0).astype(jnp.bfloat16)                               # (H, TL, E)

    kh = k_ref[0]                                                             # (H, L, E) bf16
    vh = v_ref[0]                                                             # (H, L, E) bf16

    # batched multi-head attention: one contraction over all heads, no K transpose
    s = jnp.einsum('hqe,hke->hqk', qh, kh,
                   preferred_element_type=jnp.float32)                        # (H, TL, L) f32
    m = jnp.max(s, axis=-1, keepdims=True)
    p = jnp.exp((s - m).astype(exp_dtype))                                    # bf16 exp on v6e/v7x
    l = jnp.sum(p.astype(jnp.float32), axis=-1, keepdims=True)                # (H, TL, 1) f32
    o3 = jnp.einsum('hqk,hke->hqe', p.astype(jnp.bfloat16), vh,
                    preferred_element_type=jnp.float32)                       # (H, TL, E) f32
    o3 = o3 * pl.reciprocal(l, approx=True)                                   # deferred normalization

    attn = jnp.concatenate([o3[h] for h in range(H)], axis=-1)                # (TL, D) f32
    attn = jnp.dot(attn.astype(jnp.bfloat16), wo_ref[...],
                   preferred_element_type=jnp.float32) + bo_ref[...]

    # residual + norm1 (f32)
    x1 = x_tile + attn
    y = _layer_norm(x1, g1_ref[...], be1_ref[...])

    # position-wise FFN (1x1 convs == channel matmuls)
    h1 = jnp.dot(y.astype(jnp.bfloat16), w1_ref[...],
                 preferred_element_type=jnp.float32) + b1_ref[...]
    h1 = jnp.maximum(h1, 0.0)                                                 # relu
    ff = jnp.dot(h1.astype(jnp.bfloat16), w2_ref[...],
                 preferred_element_type=jnp.float32) + b2_ref[...]

    # residual + norm2
    o_ref[0] = _layer_norm(y + ff, g2_ref[...], be2_ref[...]).astype(o_ref.dtype)


# --------------------------------- wrappers ---------------------------------

def _device_kind():
    try:
        return jax.devices()[0].device_kind.lower()
    except Exception:
        return ""


def _choose_seq_tile(L, target):
    """Largest tile <= target that divides L and is a multiple of 8 (or L itself)."""
    if L <= target:
        return L
    for tl in range(target, 7, -1):
        if L % tl == 0 and tl % 8 == 0:
            return tl
    if L > 2048:
        raise ValueError(
            f"No sequence tile <= {target} divides L={L}; pad the sequence "
            f"to a multiple of 128 before calling this kernel.")
    return L


def prepare_params(params, n_heads):
    """One-time: cast weights to bf16 and fold 1/sqrt(head_dim) into wq/bq."""
    D = params["wq"].shape[0]
    E = D // n_heads
    scale = 1.0 / math.sqrt(E)
    p = dict(params)
    p["wq"] = (params["wq"] * scale).astype(jnp.bfloat16)
    p["bq"] = (params["bq"] * scale).astype(jnp.float32)
    for name in ("wk", "wv", "wo", "w1", "w2"):
        p[name] = params[name].astype(jnp.bfloat16)
    return p


def decoder_layer_wo_cross_attn(x, params, n_heads, *, seq_tile=None, kv_tile=256):
    B, L, D = x.shape
    d_ff = params["w1"].shape[1]
    E = D // n_heads
    assert n_heads * E == D

    kind = _device_kind()
    is_v7 = "v7" in kind
    is_v6 = "v6" in kind
    exp_dtype = jnp.bfloat16 if (is_v6 or is_v7) else jnp.float32  # no bf16 EUP on v5e
    vmem_limit = (48 if is_v7 else 96) * 1024 * 1024               # v7x has 64 MiB VMEM
    if seq_tile is None:
        seq_tile = 128 if is_v7 else (512 if is_v6 else 256)

    if params["wq"].dtype != jnp.bfloat16:          # allow raw f32 params too
        params = prepare_params(params, n_heads)

    TL = _choose_seq_tile(L, seq_tile)
    TKV = _choose_seq_tile(L, kv_tile)
    n_qt = L // TL
    n_kt = L // TKV

    full = lambda shape: pl.BlockSpec(shape, lambda b, i: tuple(0 for _ in shape))

    # ---- Pass 1: bf16 head-split K/V written once per token ----
    k_heads, v_heads = pl.pallas_call(
        functools.partial(kv_proj_kernel, n_heads=n_heads),
        out_shape=(jax.ShapeDtypeStruct((B, n_heads, L, E), jnp.bfloat16),
                   jax.ShapeDtypeStruct((B, n_heads, L, E), jnp.bfloat16)),
        grid_spec=pltpu.PrefetchScalarGridSpec(
            num_scalar_prefetch=0,
            grid=(B, n_kt),
            in_specs=[
                pl.BlockSpec((1, TKV, D), lambda b, t: (b, t, 0)),
                full((D, D)), full((1, D)),                       # Wk, bk
                full((D, D)), full((1, D)),                       # Wv, bv
            ],
            out_specs=(pl.BlockSpec((1, n_heads, TKV, E), lambda b, t: (b, 0, t, 0)),
                       pl.BlockSpec((1, n_heads, TKV, E), lambda b, t: (b, 0, t, 0))),
        ),
        compiler_params=pltpu.CompilerParams(
            dimension_semantics=("parallel", "parallel"),
            vmem_limit_bytes=vmem_limit,
        ),
    )(x, params["wk"], params["bk"], params["wv"], params["bv"])

    # ---- Pass 2: attention + FFN over independent q-tiles ----
    kernel = functools.partial(decoder_layer_kernel, n_heads=n_heads, exp_dtype=exp_dtype)

    in_specs = [
        pl.BlockSpec((1, TL, D), lambda b, qi: (b, qi, 0)),                   # x tile
        pl.BlockSpec((1, n_heads, L, E), lambda b, qi: (b, 0, 0, 0)),         # K (DMA'd once per b)
        pl.BlockSpec((1, n_heads, L, E), lambda b, qi: (b, 0, 0, 0)),         # V
        full((D, D)), full((1, D)),                                           # Wq (scaled), bq
        full((D, D)), full((1, D)),                                           # Wo, bo
        full((D, d_ff)), full((1, d_ff)),                                     # conv1 as matmul
        full((d_ff, D)), full((1, D)),                                        # conv2 as matmul
        full((1, D)), full((1, D)),                                           # norm1 gamma/beta
        full((1, D)), full((1, D)),                                           # norm2 gamma/beta
    ]

    return pl.pallas_call(
        kernel,
        out_shape=jax.ShapeDtypeStruct((B, L, D), x.dtype),
        grid_spec=pltpu.PrefetchScalarGridSpec(
            num_scalar_prefetch=0,
            grid=(B, n_qt),
            in_specs=in_specs,
            out_specs=pl.BlockSpec((1, TL, D), lambda b, qi: (b, qi, 0)),
        ),
        compiler_params=pltpu.CompilerParams(
            dimension_semantics=("parallel", "parallel"),
            vmem_limit_bytes=vmem_limit,
        ),
    )(x, k_heads, v_heads,
      params["wq"], params["bq"], params["wo"], params["bo"],
      params["w1"], params["b1"], params["w2"], params["b2"],
      params["g1"], params["be1"], params["g2"], params["be2"])


def init_params(key, d_model, d_ff):
    ks = jax.random.split(key, 8)
    s = 0.02

    def w(k, shape):
        return jax.random.normal(k, shape, jnp.float32) * s

    return {
        "wq": w(ks[0], (d_model, d_model)), "bq": jnp.zeros((1, d_model), jnp.float32),
        "wk": w(ks[1], (d_model, d_model)), "bk": jnp.zeros((1, d_model), jnp.float32),
        "wv": w(ks[2], (d_model, d_model)), "bv": jnp.zeros((1, d_model), jnp.float32),
        "wo": w(ks[3], (d_model, d_model)), "bo": jnp.zeros((1, d_model), jnp.float32),
        # conv1: nn.Conv1d(d_model, d_ff, 1) weight (d_ff, d_model, 1) stored transposed
        "w1": w(ks[4], (d_model, d_ff)), "b1": jnp.zeros((1, d_ff), jnp.float32),
        # conv2: nn.Conv1d(d_ff, d_model, 1) weight (d_model, d_ff, 1) stored transposed
        "w2": w(ks[5], (d_ff, d_model)), "b2": jnp.zeros((1, d_model), jnp.float32),
        "g1": jnp.ones((1, d_model), jnp.float32), "be1": jnp.zeros((1, d_model), jnp.float32),
        "g2": jnp.ones((1, d_model), jnp.float32), "be2": jnp.zeros((1, d_model), jnp.float32),
    }


if __name__ == "__main__":
    B, L, D, H = 2, 8, 32, 4
    d_ff = 4 * D   # default d_ff = 4 * d_model

    key = jax.random.PRNGKey(0)
    kx, kp = jax.random.split(key)
    x = jax.random.normal(kx, (B, L, D), jnp.float32)
    params = prepare_params(init_params(kp, D, d_ff), n_heads=H)  # one-time bf16 cast + scale fold

    out = decoder_layer_wo_cross_attn(x, params, n_heads=H)
    out = jax.block_until_ready(out)
    assert out.shape == (B, L, D)
    assert bool(jnp.all(jnp.isfinite(out)))
    print("KERNEL_OK")
</pallas_src>

<mosaic_0001>
module attributes {stable_mosaic.version = 11 : i64} {
  func.func @kv_proj_kernel(%arg0: i32, %arg1: i32, %arg2: memref<1x8x32xf32, #tpu.memory_space<vmem>>, %arg3: memref<32x32xbf16, #tpu.memory_space<vmem>>, %arg4: memref<1x32xf32, #tpu.memory_space<vmem>>, %arg5: memref<32x32xbf16, #tpu.memory_space<vmem>>, %arg6: memref<1x32xf32, #tpu.memory_space<vmem>>, %arg7: memref<1x4x8x8xbf16, #tpu.memory_space<vmem>>, %arg8: memref<1x4x8x8xbf16, #tpu.memory_space<vmem>>) attributes {dimension_semantics = [#tpu.dimension_semantics<parallel>, #tpu.dimension_semantics<parallel>], iteration_bounds = array<i64: 2, 1>, scalar_prefetch = 0 : i64, scratch_operands = 0 : i64, tpu.core_type = #tpu.core_type<tc>, window_params = [{transform_indices = @transform_0, window_bounds = array<i64: 1, 8, 32>}, {pipeline_mode = #tpu.pipeline_mode<synchronous>, transform_indices = @transform_1, window_bounds = array<i64: 32, 32>}, {pipeline_mode = #tpu.pipeline_mode<synchronous>, transform_indices = @transform_2, window_bounds = array<i64: 1, 32>}, {pipeline_mode = #tpu.pipeline_mode<synchronous>, transform_indices = @transform_3, window_bounds = array<i64: 32, 32>}, {pipeline_mode = #tpu.pipeline_mode<synchronous>, transform_indices = @transform_4, window_bounds = array<i64: 1, 32>}, {transform_indices = @transform_5, window_bounds = array<i64: 1, 4, 8, 8>}, {transform_indices = @transform_6, window_bounds = array<i64: 1, 4, 8, 8>}]} {
    %c0 = arith.constant 0 : index
    %c0_0 = arith.constant 0 : index
    %c0_1 = arith.constant 0 : index
    %0 = vector.load %arg2[%c0, %c0_0, %c0_1] : memref<1x8x32xf32, #tpu.memory_space<vmem>>, vector<1x8x32xf32>
    %1 = vector.shape_cast %0 : vector<1x8x32xf32> to vector<8x32xf32>
    %2 = arith.truncf %1 : vector<8x32xf32> to vector<8x32xbf16>
    %c0_2 = arith.constant 0 : index
    %c0_3 = arith.constant 0 : index
    %3 = vector.load %arg3[%c0_2, %c0_3] : memref<32x32xbf16, #tpu.memory_space<vmem>>, vector<32x32xbf16>
    %cst = arith.constant dense<0.000000e+00> : vector<8x32xf32>
    %4 = tpu.matmul %2, %3, %cst {dimension_numbers = #tpu.dot_dimension_numbers<[1], [0], [0], [1], [0, 0, 1, 1], [], []>} : vector<8x32xbf16>, vector<32x32xbf16>, vector<8x32xf32> -> vector<8x32xf32>
    %c0_4 = arith.constant 0 : index
    %c0_5 = arith.constant 0 : index
    %5 = vector.load %arg4[%c0_4, %c0_5] : memref<1x32xf32, #tpu.memory_space<vmem>>, vector<1x32xf32>
    %6 = vector.broadcast %5 : vector<1x32xf32> to vector<8x32xf32>
    %7 = arith.addf %4, %6 : vector<8x32xf32>
    %c0_6 = arith.constant 0 : index
    %c0_7 = arith.constant 0 : index
    %8 = vector.load %arg5[%c0_6, %c0_7] : memref<32x32xbf16, #tpu.memory_space<vmem>>, vector<32x32xbf16>
    %cst_8 = arith.constant dense<0.000000e+00> : vector<8x32xf32>
    %9 = tpu.matmul %2, %8, %cst_8 {dimension_numbers = #tpu.dot_dimension_numbers<[1], [0], [0], [1], [0, 0, 1, 1], [], []>} : vector<8x32xbf16>, vector<32x32xbf16>, vector<8x32xf32> -> vector<8x32xf32>
    %c0_9 = arith.constant 0 : index
    %c0_10 = arith.constant 0 : index
    %10 = vector.load %arg6[%c0_9, %c0_10] : memref<1x32xf32, #tpu.memory_space<vmem>>, vector<1x32xf32>
    %11 = vector.broadcast %10 : vector<1x32xf32> to vector<8x32xf32>
    %12 = arith.addf %9, %11 : vector<8x32xf32>
    %13 = vector.extract_strided_slice %7 {offsets = [0, 0], sizes = [8, 8], strides = [1, 1]} : vector<8x32xf32> to vector<8x8xf32>
    %14 = arith.truncf %13 : vector<8x8xf32> to vector<8x8xbf16>
    %c0_11 = arith.constant 0 : index
    %c0_12 = arith.constant 0 : index
    %c0_13 = arith.constant 0 : index
    %c0_14 = arith.constant 0 : index
    %15 = vector.load %arg7[%c0_11, %c0_12, %c0_13, %c0_14] : memref<1x4x8x8xbf16, #tpu.memory_space<vmem>>, vector<1x1x8x8xbf16>
    %16 = vector.shape_cast %15 : vector<1x1x8x8xbf16> to vector<8x8xbf16>
    %17 = vector.shape_cast %14 : vector<8x8xbf16> to vector<1x1x8x8xbf16>
    tpu.vector_store %arg7[%c0_11, %c0_12, %c0_13, %c0_14], %17 {strides = array<i32>} : memref<1x4x8x8xbf16, #tpu.memory_space<vmem>>, vector<1x1x8x8xbf16>,
    %18 = vector.extract_strided_slice %12 {offsets = [0, 0], sizes = [8, 8], strides = [1, 1]} : vector<8x32xf32> to vector<8x8xf32>
    %19 = arith.truncf %18 : vector<8x8xf32> to vector<8x8xbf16>
    %c0_15 = arith.constant 0 : index
    %c0_16 = arith.constant 0 : index
    %c0_17 = arith.constant 0 : index
    %c0_18 = arith.constant 0 : index
    %20 = vector.load %arg8[%c0_15, %c0_16, %c0_17, %c0_18] : memref<1x4x8x8xbf16, #tpu.memory_space<vmem>>, vector<1x1x8x8xbf16>
    %21 = vector.shape_cast %20 : vector<1x1x8x8xbf16> to vector<8x8xbf16>
    %22 = vector.shape_cast %19 : vector<8x8xbf16> to vector<1x1x8x8xbf16>
    tpu.vector_store %arg8[%c0_15, %c0_16, %c0_17, %c0_18], %22 {strides = array<i32>} : memref<1x4x8x8xbf16, #tpu.memory_space<vmem>>, vector<1x1x8x8xbf16>,
    %23 = vector.extract_strided_slice %7 {offsets = [0, 8], sizes = [8, 8], strides = [1, 1]} : vector<8x32xf32> to vector<8x8xf32>
    %24 = arith.truncf %23 : vector<8x8xf32> to vector<8x8xbf16>
    %c0_19 = arith.constant 0 : index
    %c1 = arith.constant 1 : index
    %c0_20 = arith.constant 0 : index
    %c0_21 = arith.constant 0 : index
    %25 = vector.load %arg7[%c0_19, %c1, %c0_20, %c0_21] : memref<1x4x8x8xbf16, #tpu.memory_space<vmem>>, vector<1x1x8x8xbf16>
    %26 = vector.shape_cast %25 : vector<1x1x8x8xbf16> to vector<8x8xbf16>
    %27 = vector.shape_cast %24 : vector<8x8xbf16> to vector<1x1x8x8xbf16>
    tpu.vector_store %arg7[%c0_19, %c1, %c0_20, %c0_21], %27 {strides = array<i32>} : memref<1x4x8x8xbf16, #tpu.memory_space<vmem>>, vector<1x1x8x8xbf16>,
    %28 = vector.extract_strided_slice %12 {offsets = [0, 8], sizes = [8, 8], strides = [1, 1]} : vector<8x32xf32> to vector<8x8xf32>
    %29 = arith.truncf %28 : vector<8x8xf32> to vector<8x8xbf16>
    %c0_22 = arith.constant 0 : index
    %c1_23 = arith.constant 1 : index
    %c0_24 = arith.constant 0 : index
    %c0_25 = arith.constant 0 : index
    %30 = vector.load %arg8[%c0_22, %c1_23, %c0_24, %c0_25] : memref<1x4x8x8xbf16, #tpu.memory_space<vmem>>, vector<1x1x8x8xbf16>
    %31 = vector.shape_cast %30 : vector<1x1x8x8xbf16> to vector<8x8xbf16>
    %32 = vector.shape_cast %29 : vector<8x8xbf16> to vector<1x1x8x8xbf16>
    tpu.vector_store %arg8[%c0_22, %c1_23, %c0_24, %c0_25], %32 {strides = array<i32>} : memref<1x4x8x8xbf16, #tpu.memory_space<vmem>>, vector<1x1x8x8xbf16>,
    %33 = vector.extract_strided_slice %7 {offsets = [0, 16], sizes = [8, 8], strides = [1, 1]} : vector<8x32xf32> to vector<8x8xf32>
    %34 = arith.truncf %33 : vector<8x8xf32> to vector<8x8xbf16>
    %c0_26 = arith.constant 0 : index
    %c2 = arith.constant 2 : index
    %c0_27 = arith.constant 0 : index
    %c0_28 = arith.constant 0 : index
    %35 = vector.load %arg7[%c0_26, %c2, %c0_27, %c0_28] : memref<1x4x8x8xbf16, #tpu.memory_space<vmem>>, vector<1x1x8x8xbf16>
    %36 = vector.shape_cast %35 : vector<1x1x8x8xbf16> to vector<8x8xbf16>
    %37 = vector.shape_cast %34 : vector<8x8xbf16> to vector<1x1x8x8xbf16>
    tpu.vector_store %arg7[%c0_26, %c2, %c0_27, %c0_28], %37 {strides = array<i32>} : memref<1x4x8x8xbf16, #tpu.memory_space<vmem>>, vector<1x1x8x8xbf16>,
    %38 = vector.extract_strided_slice %12 {offsets = [0, 16], sizes = [8, 8], strides = [1, 1]} : vector<8x32xf32> to vector<8x8xf32>
    %39 = arith.truncf %38 : vector<8x8xf32> to vector<8x8xbf16>
    %c0_29 = arith.constant 0 : index
    %c2_30 = arith.constant 2 : index
    %c0_31 = arith.constant 0 : index
    %c0_32 = arith.constant 0 : index
    %40 = vector.load %arg8[%c0_29, %c2_30, %c0_31, %c0_32] : memref<1x4x8x8xbf16, #tpu.memory_space<vmem>>, vector<1x1x8x8xbf16>
    %41 = vector.shape_cast %40 : vector<1x1x8x8xbf16> to vector<8x8xbf16>
    %42 = vector.shape_cast %39 : vector<8x8xbf16> to vector<1x1x8x8xbf16>
    tpu.vector_store %arg8[%c0_29, %c2_30, %c0_31, %c0_32], %42 {strides = array<i32>} : memref<1x4x8x8xbf16, #tpu.memory_space<vmem>>, vector<1x1x8x8xbf16>,
    %43 = vector.extract_strided_slice %7 {offsets = [0, 24], sizes = [8, 8], strides = [1, 1]} : vector<8x32xf32> to vector<8x8xf32>
    %44 = arith.truncf %43 : vector<8x8xf32> to vector<8x8xbf16>
    %c0_33 = arith.constant 0 : index
    %c3 = arith.constant 3 : index
    %c0_34 = arith.constant 0 : index
    %c0_35 = arith.constant 0 : index
    %45 = vector.load %arg7[%c0_33, %c3, %c0_34, %c0_35] : memref<1x4x8x8xbf16, #tpu.memory_space<vmem>>, vector<1x1x8x8xbf16>
    %46 = vector.shape_cast %45 : vector<1x1x8x8xbf16> to vector<8x8xbf16>
    %47 = vector.shape_cast %44 : vector<8x8xbf16> to vector<1x1x8x8xbf16>
    tpu.vector_store %arg7[%c0_33, %c3, %c0_34, %c0_35], %47 {strides = array<i32>} : memref<1x4x8x8xbf16, #tpu.memory_space<vmem>>, vector<1x1x8x8xbf16>,
    %48 = vector.extract_strided_slice %12 {offsets = [0, 24], sizes = [8, 8], strides = [1, 1]} : vector<8x32xf32> to vector<8x8xf32>
    %49 = arith.truncf %48 : vector<8x8xf32> to vector<8x8xbf16>
    %c0_36 = arith.constant 0 : index
    %c3_37 = arith.constant 3 : index
    %c0_38 = arith.constant 0 : index
    %c0_39 = arith.constant 0 : index
    %50 = vector.load %arg8[%c0_36, %c3_37, %c0_38, %c0_39] : memref<1x4x8x8xbf16, #tpu.memory_space<vmem>>, vector<1x1x8x8xbf16>
    %51 = vector.shape_cast %50 : vector<1x1x8x8xbf16> to vector<8x8xbf16>
    %52 = vector.shape_cast %49 : vector<8x8xbf16> to vector<1x1x8x8xbf16>
    tpu.vector_store %arg8[%c0_36, %c3_37, %c0_38, %c0_39], %52 {strides = array<i32>} : memref<1x4x8x8xbf16, #tpu.memory_space<vmem>>, vector<1x1x8x8xbf16>,
    return
  }
  func.func @transform_0(%arg0: i32, %arg1: i32) -> (i32, i32, i32) {
    %c0_i32 = arith.constant 0 : i32
    %c0_i32_0 = arith.constant 0 : i32
    return %arg0, %arg1, %c0_i32 : i32, i32, i32
  }
  func.func @transform_1(%arg0: i32, %arg1: i32) -> (i32, i32) {
    %c0_i32 = arith.constant 0 : i32
    %c0_i32_0 = arith.constant 0 : i32
    %c0_i32_1 = arith.constant 0 : i32
    return %c0_i32, %c0_i32_0 : i32, i32
  }
  func.func @transform_2(%arg0: i32, %arg1: i32) -> (i32, i32) {
    %c0_i32 = arith.constant 0 : i32
    %c0_i32_0 = arith.constant 0 : i32
    %c0_i32_1 = arith.constant 0 : i32
    return %c0_i32, %c0_i32_0 : i32, i32
  }
  func.func @transform_3(%arg0: i32, %arg1: i32) -> (i32, i32) {
    %c0_i32 = arith.constant 0 : i32
    %c0_i32_0 = arith.constant 0 : i32
    %c0_i32_1 = arith.constant 0 : i32
    return %c0_i32, %c0_i32_0 : i32, i32
  }
  func.func @transform_4(%arg0: i32, %arg1: i32) -> (i32, i32) {
    %c0_i32 = arith.constant 0 : i32
    %c0_i32_0 = arith.constant 0 : i32
    %c0_i32_1 = arith.constant 0 : i32
    return %c0_i32, %c0_i32_0 : i32, i32
  }
  func.func @transform_5(%arg0: i32, %arg1: i32) -> (i32, i32, i32, i32) {
    %c0_i32 = arith.constant 0 : i32
    %c0_i32_0 = arith.constant 0 : i32
    %c0_i32_1 = arith.constant 0 : i32
    return %arg0, %c0_i32, %arg1, %c0_i32_0 : i32, i32, i32, i32
  }
  func.func @transform_6(%arg0: i32, %arg1: i32) -> (i32, i32, i32, i32) {
    %c0_i32 = arith.constant 0 : i32
    %c0_i32_0 = arith.constant 0 : i32
    %c0_i32_1 = arith.constant 0 : i32
    return %arg0, %c0_i32, %arg1, %c0_i32_0 : i32, i32, i32, i32
  }
}

</mosaic_0001>

<bundles_post_ra>
// kernel: tpu_custom_call.1
= control target key start
LH: loop header
LB: loop body
LE: loop exit
PB: predicated region body
PF: predicated region fallthrough
CT: control target
= control target key end

     0   :  { %s1574_s0 = inlined_call_operand.hbm [shape: f32[2,8,32], index: 0, kind: input, shape index: {}]   ;;  %s1575_s1 = inlined_call_operand.hbm [shape: bf16[32,32], index: 1, kind: input, shape index: {}]   ;;  %s1576_s2 = inlined_call_operand.hbm [shape: f32[1,32], index: 2, kind: input, shape index: {}]   ;;  %s1577_s3 = inlined_call_operand.hbm [shape: bf16[32,32], index: 3, kind: input, shape index: {}]   ;;  %s1578_s4 = inlined_call_operand.hbm [shape: f32[1,32], index: 4, kind: input, shape index: {}]   ;;  %s1579_s5 = inlined_call_operand.hbm [shape: bf16[2,4,8,8], index: 5, kind: output, shape index: {0}]   ;;  %s1580_s6 = inlined_call_operand.hbm [shape: bf16[2,4,8,8], index: 6, kind: output, shape index: {1}]  }
   0x1   :  { %1586 = sst [smem:[#allocation19_spill]] %s1575_s1 }
   0x2   :  { %12 = vsyncpa [#allocation3], 0 }
   0x3   :  { %14 = vsyncpa [#allocation3 + $0x1], 0 }
   0x4   :  { %15 = vsyncpa [#allocation6], 0 }
   0x5   :  { %16 = vsyncpa [#allocation9], 0 }
   0x6   :  { %17 = vsyncpa [#allocation4], 0 }
   0x7   :  { %19 = vsyncpa [#allocation4 + $0x1], 0 }
   0x8   :  { %20 = vsyncpa [#allocation13], 0 }
   0x9   :  { %22 = vsyncpa [#allocation13 + $0x1], 0  ;;  %s1224_s21 = smov 0   ;;  %s1226_s22 = smov 0  }
   0xa   :  { %s1228_s23 = smov 0   ;;  %s1230_s24 = smov 0  }
   0xb   :  { %s1232_s25 = smov 0   ;;  %s1234_s26 = smov 0  }
   0xc LB: > { %s1581_s27 = sadd.s32 4294967295, %s1171_s26   ;;  %p720_p0 = scmp.ge.s32.totalorder %s1171_s26, 1  ;;  %s1171_s26 = sphi %s1234_s26, %s28_s26   ;;  %s1167_s25 = sphi %s1232_s25, %s1608_s25   ;;  %s1163_s24 = sphi %s1230_s24, %s1607_s24   ;;  %s1159_s23 = sphi %s1228_s23, %s1606_s23   ;;  %s1155_s22 = sphi %s1226_s22, %s1605_s22   ;;  %s1151_s21 = sphi %s1224_s21, %s1604_s21  }
   0xd   : > { %p1258_p1 = scmp.eq.s32.totalorder %s1581_s27, 0  ;;  %p213_p2 = scmp.lt.s32.totalorder %s1171_s26, 3 }
   0xe   : > { %s1173_s30 = smov [#allocation5]   ;;  %s1174_s9 = smov [#allocation8]  }
   0xf   : > { %s1587_s28 = scalar_select %p1258_p1, 1, 0 }
  0x10   : > { %p1263_p3 = pnand %p720_p0, %p213_p2  ;;  %s225_s7 = sshll.u32 %s1173_s30, 4  ;;  %s1267_s7 = int_to_ptr.vmem [resolvable:$true] %s225_s7 }
  0x11   : > { %s249_s10 = sshll.u32 %s1174_s9, 4  ;;  %s1175_s11 = smov [#allocation7]   ;;  %s1278_s10 = int_to_ptr.vmem [resolvable:$true] %s249_s10 }
  0x12   : > { %s1588_s29 = scalar_select %p1263_p3, 1, 0 }
  0x13   : > { %p808_p4 = pneg %p1263_p3  ;;  %s1280_s12 = sshll.u32 %s1175_s11, 4  ;;  %s240_s12 = int_to_ptr.vmem [resolvable:$true] %s1280_s12 }
  0x14   : > { %s1590_s1 = sld [smem:[#allocation19_spill]] }
  0x15   : > { %p1274_p6 = pnand %p808_p4, %p1258_p1 }
  0x17   : > { %p1290_p8 = pneg %p1274_p6 }
  0x1a   : > { %s907_s15 = scalar_lea.hbm %s1590_s1, 256 }
  0x1b   : > { %p908_p7 = scmp.ne.s32.totalorder %s1590_s1, %s907_s15  ;;  %p914_p11 = scmp.lt.u32.totalorder %s907_s15, %s1590_s1 }
  0x1d   : > { %p910_p9 = pnand %p1290_p8, %p908_p7 }
  0x1f   : > { %p911_p10 = pneg %p910_p9 }
  0x21   : > { %p916_p12 = pnand %p914_p11, %p911_p10 }
  0x23   : > { %919 = shalt.err (!%p916_p12)
}
  0x24   : > { %s920_s30 = scalar_lea.vmem %s1267_s7, 256  ;;  %p928_p4 = scmp.lt.s32.totalorder %s1267_s7, %s1267_s7 }
  0x25   : > { %p921_p13 = scmp.ne.s32.totalorder %s1267_s7, %s920_s30  ;;  %p929_p5 = scmp.lt.s32.totalorder %s920_s30, %s920_s30 }
  0x27   : > { %p923_p0 = pnand %p921_p13, %p1290_p8  ;;  %p930_p7 = por %p929_p5, %p928_p4 }
  0x29   : > { %p924_p2 = pneg %p923_p0 }
  0x2b   : > { %p931_p9 = pnand %p930_p7, %p924_p2 }
  0x2d   : > { %934 = shalt.err (!%p931_p9)
}
  0x2e   : > { %s1176_s9 = smov 64   ;;  %s1177_s11 = smov 4  }
  0x2f   : > { %811 = dma.hbm_to_vmem [thread:$0]  (!%p1274_p6), %s1590_s1, 256, %s1267_s7, [#allocation6], %s1176_s9, %s1176_s9, %s1177_s11  }
  0x30   : > { %s935_s17 = scalar_lea.hbm %s1577_s3, 256 }
  0x31   : > { %p936_p5 = scmp.ne.s32.totalorder %s1577_s3, %s935_s17  ;;  %p942_p12 = scmp.lt.u32.totalorder %s935_s17, %s1577_s3 }
  0x33   : > { %p938_p10 = pnand %p936_p5, %p1290_p8 }
  0x35   : > { %p939_p11 = pneg %p938_p10 }
  0x37   : > { %p944_p13 = pnand %p942_p12, %p939_p11 }
  0x39   : > { %947 = shalt.err (!%p944_p13)
}
  0x3a   : > { %s948_s7 = scalar_lea.vmem %s1278_s10, 256  ;;  %p956_p7 = scmp.lt.s32.totalorder %s1278_s10, %s1278_s10 }
  0x3b   : > { %p949_p0 = scmp.ne.s32.totalorder %s1278_s10, %s948_s7  ;;  %p957_p9 = scmp.lt.s32.totalorder %s948_s7, %s948_s7 }
  0x3d   : > { %p951_p2 = pnand %p949_p0, %p1290_p8  ;;  %p958_p5 = por %p957_p9, %p956_p7 }
  0x3f   : > { %p952_p4 = pneg %p951_p2 }
  0x41   : > { %p959_p10 = pnand %p958_p5, %p952_p4 }
  0x43   : > { %962 = shalt.err (!%p959_p10)
}
  0x44   : > { %817 = dma.hbm_to_vmem [thread:$0]  (!%p1274_p6), %s1577_s3, 256, %s1278_s10, [#allocation9], %s1176_s9, %s1176_s9, %s1177_s11  }
  0x45   : > { %s963_s16 = scalar_lea.hbm %s1576_s2, 16 }
  0x46   : > { %p964_p11 = scmp.ne.s32.totalorder %s1576_s2, %s963_s16  ;;  %p970_p0 = scmp.lt.u32.totalorder %s963_s16, %s1576_s2 }
  0x48   : > { %p966_p12 = pnand %p964_p11, %p1290_p8 }
  0x4a   : > { %p967_p13 = pneg %p966_p12 }
  0x4c   : > { %p972_p2 = pnand %p970_p0, %p967_p13 }
  0x4e   : > { %975 = shalt.err (!%p972_p2)
}
  0x4f   : > { %s976_s7 = scalar_lea.vmem %s240_s12, 16  ;;  %s983_s10 = scalar_lea.vmem %s240_s12, 32 }
  0x50   : > { %p977_p4 = scmp.ne.s32.totalorder %s240_s12, %s976_s7  ;;  %p984_p5 = scmp.lt.s32.totalorder %s240_s12, %s240_s12 }
  0x51   : > { %p985_p10 = scmp.lt.s32.totalorder %s983_s10, %s976_s7 }
  0x52   : > { %p979_p7 = pnand %p977_p4, %p1290_p8 }
  0x53   : > { %p986_p3 = por %p985_p10, %p984_p5 }
  0x54   : > { %p980_p9 = pneg %p979_p7 }
  0x56   : > { %p987_p1 = pnand %p986_p3, %p980_p9 }
  0x58   : > { %990 = shalt.err (!%p987_p1)
}
  0x59   : > { %814 = dma.hbm_to_vmem [thread:$0]  (!%p1274_p6), %s1576_s2, 16, %s240_s12, [#allocation6]  }
  0x5a   : > { %s1178_s27 = smov [#allocation10]   ;;  %s991_s16 = scalar_lea.hbm %s1578_s4, 16 }
  0x5b   : > { %s263_s13 = sshll.u32 %s1178_s27, 4  ;;  %p992_p11 = scmp.ne.s32.totalorder %s1578_s4, %s991_s16  ;;  %s264_s13 = int_to_ptr.vmem [resolvable:$true] %s263_s13 }
  0x5c   : > { %p998_p12 = scmp.lt.u32.totalorder %s991_s16, %s1578_s4 }
  0x5d   : > { %p994_p1 = pnand %p992_p11, %p1290_p8 }
  0x5f   : > { %p995_p3 = pneg %p994_p1 }
  0x61   : > { %p1000_p13 = pnand %p998_p12, %p995_p3 }
  0x63   : > { %1003 = shalt.err (!%p1000_p13)
}
  0x64   : > { %s1004_s12 = scalar_lea.vmem %s264_s13, 16  ;;  %s1011_s7 = scalar_lea.vmem %s264_s13, 32 }
  0x65   : > { %p1005_p0 = scmp.ne.s32.totalorder %s264_s13, %s1004_s12  ;;  %p1012_p7 = scmp.lt.s32.totalorder %s264_s13, %s264_s13 }
  0x66   : > { %p1013_p9 = scmp.lt.s32.totalorder %s1011_s7, %s1004_s12 }
  0x67   : > { %p1007_p2 = pnand %p1005_p0, %p1290_p8 }
  0x68   : > { %p1014_p5 = por %p1013_p9, %p1012_p7 }
  0x69   : > { %p1008_p4 = pneg %p1007_p2 }
  0x6b   : > { %p1015_p10 = pnand %p1014_p5, %p1008_p4 }
  0x6d   : > { %1018 = shalt.err (!%p1015_p10)
}
  0x6e   : > { %820 = dma.hbm_to_vmem [thread:$0]  (!%p1274_p6), %s1578_s4, 16, %s264_s13, [#allocation9]  }
  0x6f   : > { %s719_s18 = sadd.s32 4294967294, %s1171_s26   ;;  %s40_s11 = sadd.s32 1, %s1167_s25 }
  0x70   : > { %p42_p8 = scmp.ge.s32.totalorder %s40_s11, 2  ;;  %s49_s8 = sadd.s32 1, %s1159_s23 }
  0x71   : > { %p56_p11 = scmp.ne.s32.totalorder %s1159_s23, %s1155_s22  ;;  %p57_p1 = scmp.eq.s32.totalorder %s1171_s26, 0 }
  0x72   : > { %s1610_s11 = smov (%p42_p8, %s40_s11), 0  ;;  %p62_p12 = scmp.ne.s32.totalorder %s1155_s22, %s1151_s21 }
  0x73   : > { %p1379_p3 = por %p57_p1, %p56_p11  ;;  %s44_s13 = ssub.s32 %s1167_s25, %s1610_s11 }
  0x74   : > { %s1593_s14 = sadd.s32 4294967295, %s1171_s26   ;;  %p47_p13 = scmp.eq.s32.totalorder %s44_s13, 0 }
  0x75   : > { %p172_p6 = scmp.eq.s32.totalorder %s1593_s14, 1  ;;  %p1594_p0 = scmp.ne.s32.totalorder %s1587_s28, 0 }
  0x76   : > { %p178_p7 = scmp.eq.s32.totalorder %s719_s18, 1  ;;  %p836_p5 = scmp.lt.s32.totalorder %s1171_s26, 2 }
  0x77   : > { %p1391_p2 = por %p1594_p0, %p62_p12  ;;  %p1395_p4 = por %p172_p6, %p56_p11 }
  0x78   : > { %s1400_s17 = scalar_select %p47_p13, %s1159_s23, %s49_s8  }
  0x79   : > { %s1596_s16 = scalar_select %p1395_p4, 1, 0 }
  0x7a   : > { %p1402_p9 = por %p178_p7, %p62_p12  ;;  %s274_s20 = sand.u32 1, %s1159_s23  }
  0x7b   : > { %s727_s30 = sshll.u32 %s1167_s25, 7  ;;  %s726_s12 = sshll.u32 %s274_s20, 3 }
  0x7c   : > { %s1597_s19 = scalar_select %p1402_p9, 1, 0 }
  0x7d   : > { %s1412_s9 = scalar_lea.hbm %s1574_s0, %s727_s30  ;;  %s278_s18 = scalar_lea.vmem [#allocation2], %s726_s12 }
  0x7e   : > { %s286_s8 = sshll.u32 %s278_s18, 4  ;;  %p1416_p10 = pnand %p836_p5, %p1379_p3  ;;  %s1420_s8 = int_to_ptr.vmem [resolvable:$true] %s286_s8 }
  0x7f   : > { %s275_s14 = scalar_lea.sflag [#allocation3], %s274_s20  ;;  %s1019_s1 = scalar_lea.hbm %s1412_s9, 128 }
  0x80   : > { %p1020_p8 = scmp.ne.s32.totalorder %s1412_s9, %s1019_s1  ;;  %p1021_p11 = pneg %p1416_p10 }
  0x81   : > { %s1024_s27 = scalar_lea.hbm %s1574_s0, 256  ;;  %p1025_p3 = scmp.lt.u32.totalorder %s1412_s9, %s1574_s0 }
  0x82   : > { %p1022_p1 = pnand %p1021_p11, %p1020_p8  ;;  %p1026_p6 = scmp.lt.u32.totalorder %s1024_s27, %s1019_s1 }
  0x83   : > { %p1028_p0 = scmp.lt.u32.totalorder %s1019_s1, %s1412_s9 }
  0x84   : > { %p1023_p12 = pneg %p1022_p1  ;;  %p1027_p13 = por %p1026_p6, %p1025_p3 }
  0x86   : > { %p1029_p7 = por %p1028_p0, %p1027_p13 }
  0x88   : > { %p1030_p5 = pnand %p1029_p7, %p1023_p12 }
  0x8a   : > { %1033 = shalt.err (!%p1030_p5)
}
  0x8b   : > { %s1034_s20 = scalar_lea.vmem %s1420_s8, 128  ;;  %s1179_s18 = smov [#allocation2]  }
  0x8c   : > { %p1035_p8 = scmp.ne.s32.totalorder %s1420_s8, %s1034_s20  ;;  %s1039_s30 = sshll.u32 %s1179_s18, 4  ;;  %s1040_s30 = int_to_ptr.vmem [resolvable:$false] %s1039_s30 }
  0x8d   : > { %s1041_s12 = scalar_lea.vmem %s1040_s30, 256  ;;  %p1042_p4 = scmp.lt.s32.totalorder %s1420_s8, %s1040_s30 }
  0x8e   : > { %p1037_p1 = pnand %p1035_p8, %p1021_p11  ;;  %p1043_p3 = scmp.lt.s32.totalorder %s1041_s12, %s1034_s20 }
  0x90   : > { %p1038_p9 = pneg %p1037_p1  ;;  %p1044_p6 = por %p1043_p3, %p1042_p4 }
  0x92   : > { %p1045_p13 = pnand %p1044_p6, %p1038_p9 }
  0x94   : > { %1048 = shalt.err (!%p1045_p13)
}
  0x95   : > { %824 = dma.hbm_to_vmem [thread:$0]  (!%p1416_p10), %s1412_s9, 128, %s1420_s8, %s275_s14  }
  0x96   : > { %p1599_p12 = scmp.ne.s32.totalorder %s1588_s29, 0 }
  0x97   : > { %s1450_s1 = sand.u32 (!%p1599_p12), 1, %s1155_s22  }
  0x98   : > { %295 = sbr.rel (%p1599_p12) target bundleno = 552 (0x228), region = 40  ;;  %s729_s27 = sshll.u32 (!%p1599_p12), %s1450_s1, 3 }
  0x99   : > { %s298_s7 = scalar_lea.sflag (!%p1599_p12), [#allocation3], %s1450_s1  ;;  %s301_s10 = scalar_lea.vmem (!%p1599_p12), [#allocation2], %s729_s27 }
  0x9f   : > { %1130 = dma.done.wait (%p1391_p2), %s298_s7, 128  }
  0xa0   : > { %1132 = vsyncadd (%p1391_p2), %s298_s7, 4294967168  ;;  %p1600_p4 = scmp.ne.s32.totalorder %s1587_s28, 0 }
  0xa2   : > { %1134 = dma.done.wait (%p1600_p4), [#allocation6], 272  }
  0xa3   : > { %1136 = vsyncadd (%p1600_p4), [#allocation6], 4294967024 }
  0xa4   : > { %1138 = dma.done.wait (%p1600_p4), [#allocation9], 272  }
  0xa5   : > { %1140 = vsyncadd (%p1600_p4), [#allocation9], 4294967024  ;;  %v1180_v0 = vmov 0.0   ;;  %vm1181_vm0 = vmmov 0   ;;  %v903_v1 = vld [vmem:[#allocation5] sm:$0xff]   ;;  %v904_v2 = vld [vmem:[#allocation8] sm:$0xff]  }
  0xa6   : > { %770 = vmatprep.subr.bf16.mxu0 %v1180_v0  ;;  %778 = vmatprep.subr.bf16.mxu1 %v1180_v0  ;;  %v905_v3 = vld [vmem:[#allocation5 + $0x8] sm:$0xff]   ;;  %v906_v4 = vld [vmem:[#allocation8 + $0x8] sm:$0xff]   ;;  %vm377_vm1 = vcmask 261120   ;;  %s734_s28 = sshll.u32 %s1450_s1, 4  ;;  %v736_v7 = vld [vmem:[#allocation7] ss:$0 sm:$0xff] }
  0xa7   : > { %774 = vmatprep.mubr.msk.bf16.mxu0 %vm1181_vm0, %v1180_v0  ;;  %782 = vmatprep.mubr.msk.bf16.mxu1 %vm1181_vm0, %v1180_v0  ;;  %v352_v5 = vld [vmem:[%s301_s10] sm:$0xff]  ;;  %v740_v8 = vld [vmem:[#allocation10] ss:$0 sm:$0xff]  ;;  %vm485_vm2 = vcmask 60416   ;;  %s1467_s29 = scalar_lea.vmem [#allocation11], %s734_s28  ;;  %s1182_s15 = smov 112  }
  0xa8   : > { %771 = vmatpush3.bf16.msra.mxu0 %v903_v1  ;;  %779 = vmatpush3.bf16.msra.mxu1 %v904_v2  ;;  %v353_v6 = vpack.c.bf16 %v352_v5, %v352_v5  ;;  %s1183_s9 = smov 120   ;;  %s350_s8 = scalar_lea.vmem [#allocation12], %s734_s28 }
  0xa9   : > { %772 = vmatprep.subr.bf16.mxu0 %v1180_v0  ;;  %780 = vmatprep.subr.bf16.mxu1 %v1180_v0  ;;  %s1184_s13 = smov 104   ;;  %s545_s14 = sshll.u32 %s1467_s29, 4  ;;  %s1478_s14 = int_to_ptr.vmem [resolvable:$true] %s545_s14 }
  0xaa   : > { %s562_s20 = sshll.u32 %s350_s8, 4  ;;  %s762_s18 = sshll.u32 %s1163_s24, 8  ;;  %s1480_s20 = int_to_ptr.vmem [resolvable:$true] %s562_s20 }
  0xab   : > { %s1487_s27 = scalar_lea.hbm %s1579_s5, %s762_s18  ;;  %s1492_s10 = scalar_lea.hbm %s1580_s6, %s762_s18 }
  0xac   : > { %773 = vmatpush3.bf16.msra.mxu0 %v905_v3  ;;  %781 = vmatpush3.bf16.msra.mxu1 %v906_v4  ;;  %s526_s28 = scalar_lea.sflag [#allocation4], %s1450_s1  ;;  %p1601_p9 = scmp.ne.s32.totalorder %s1596_s16, 0 }
  0xaf   : > { %775 = vmatmul.mubr.msk.bf16.vlgmr.msra.gmra.mrb[0].mxu0 %vm377_vm1, %v353_v6  ;;  %783 = vmatmul.mubr.msk.bf16.vlgmr.msra.gmra.mrb[0].mxu1 %vm377_vm1, %v353_v6 }
 0x182   : > { %v415_v9 = vpop.f32.mrb[0].mxu0  ;;  %v478_v12 = vpop.f32.mrb[0].mxu1 }
 0x183   : > { %v416_v10 = vadd.f32 %v736_v7, %v415_v9  ;;  %v776_v11 = vpop.f32.mrb[1].mxu0  ;;  %v479_v13 = vadd.f32 %v740_v8, %v478_v12  ;;  %v784_v15 = vpop.f32.mrb[1].mxu1 }
 0x184   : > { %v418_v14 = vpop.f32.mrb[2].mxu0  ;;  %v481_v18 = vpop.f32.mrb[2].mxu1 }
 0x185   : > { %v484_v16 = vpack.c.bf16 %v416_v10, %v416_v10  ;;  %v777_v17 = vpop.f32.mrb[3].mxu0  ;;  %v487_v19 = vpack.c.bf16 %v479_v13, %v479_v13  ;;  %v785_v20 = vpop.f32.mrb[3].mxu1 }
 0x187   : > { %486 = vst.msk [vmem:[%s1467_s29] sm:$0xf] %vm485_vm2, %v484_v16  ;;  %505 = vrot.lane.b32.xlu1 %v484_v16, %s1182_s15  ;;  %492 = vrot.lane.b32.xlu0 %v484_v16, %s1183_s9  ;;  %488 = vst.msk [vmem:[%s350_s8] sm:$0xf] %vm485_vm2, %v487_v19 }
 0x18b   : > { %510 = vrot.lane.b32.xlu1 %v487_v19, %s1182_s15  ;;  %500 = vrot.lane.b32.xlu0 %v487_v19, %s1183_s9  ;;  %s1049_s15 = scalar_lea.vmem %s1478_s14, 256  ;;  %s1185_s9 = smov [#allocation11]  }
 0x18c   : > { %p1050_p2 = scmp.ne.s32.totalorder %s1478_s14, %s1049_s15 }
 0x18e   : > { %p1051_p10 = pnand %p1050_p2, %p1601_p9 }
 0x18f   : > { %520 = vrot.lane.b32.xlu1 %v487_v19, %s1184_s13  ;;  %515 = vrot.lane.b32.xlu0 %v484_v16, %s1184_s13  ;;  %s1053_s13 = sshll.u32 %s1185_s9, 4  ;;  %s1054_s13 = int_to_ptr.vmem [resolvable:$false] %s1053_s13 }
 0x190   : > { %p1052_p11 = pneg %p1051_p10  ;;  %s1055_s30 = scalar_lea.vmem %s1054_s13, 512 }
 0x191   : > { %p1056_p0 = scmp.lt.s32.totalorder %s1478_s14, %s1054_s13  ;;  %p1057_p7 = scmp.lt.s32.totalorder %s1055_s30, %s1049_s15 }
 0x193   : > { %p1058_p5 = por %p1057_p7, %p1056_p0 }
 0x195   : > { %p1059_p8 = pnand %p1058_p5, %p1052_p11 }
 0x1f9   : > { %v506_v21 = vpop.permute.xlu1 %505  ;;  %v493_v22 = vpop.permute.xlu0 %492 }
 0x1fa   : > { %748 = vst.msk [vmem:[%s1467_s29 + $0x8] sm:$0xf] %vm485_vm2, %v506_v21  ;;  %745 = vst.msk [vmem:[%s1467_s29 + $0x4] sm:$0xf] %vm485_vm2, %v493_v22 }
 0x1fd   : > { %v511_v23 = vpop.permute.xlu1 %510  ;;  %v501_v24 = vpop.permute.xlu0 %500 }
 0x1fe   : > { %749 = vst.msk [vmem:[%s350_s8 + $0x8] sm:$0xf] %vm485_vm2, %v511_v23  ;;  %747 = vst.msk [vmem:[%s350_s8 + $0x4] sm:$0xf] %vm485_vm2, %v501_v24 }
 0x201   : > { %v521_v25 = vpop.permute.xlu1 %520  ;;  %v516_v26 = vpop.permute.xlu0 %515 }
 0x202   : > { %751 = vst.msk [vmem:[%s350_s8 + $0xc] sm:$0xf] %vm485_vm2, %v521_v25  ;;  %750 = vst.msk [vmem:[%s1467_s29 + $0xc] sm:$0xf] %vm485_vm2, %v516_v26 }
 0x203   : > { %1062 = shalt.err (!%p1059_p8)
}
 0x204   : > { %s1063_s29 = scalar_lea.hbm %s1487_s27, 256  ;;  %s1067_s12 = scalar_lea.hbm %s1579_s5, 512 }
 0x205   : > { %p1064_p1 = scmp.ne.s32.totalorder %s1487_s27, %s1063_s29  ;;  %p1068_p13 = scmp.lt.u32.totalorder %s1487_s27, %s1579_s5 }
 0x206   : > { %p1069_p12 = scmp.lt.u32.totalorder %s1067_s12, %s1063_s29  ;;  %p1071_p2 = scmp.lt.u32.totalorder %s1063_s29, %s1487_s27 }
 0x207   : > { %p1065_p3 = pnand %p1064_p1, %p1601_p9 }
 0x208   : > { %p1070_p4 = por %p1069_p12, %p1068_p13 }
 0x209   : > { %p1066_p6 = pneg %p1065_p3 }
 0x20a   : > { %p1072_p10 = por %p1071_p2, %p1070_p4 }
 0x20c   : > { %p1073_p11 = pnand %p1072_p10, %p1066_p6 }
 0x20e   : > { %1076 = shalt.err (!%p1073_p11)
}
 0x20f   : > { %s1186_s15 = smov 64   ;;  %s1187_s9 = smov 4  }
 0x210   : > { %804 = dma.vmem_to_hbm [thread:$0]  (%p1601_p9), %s1478_s14, 256, %s1487_s27, %s526_s28, %s1186_s15, %s1186_s15, %s1187_s9  }
 0x211   : > { %s531_s13 = scalar_lea.sflag [#allocation13], %s1450_s1  ;;  %s1077_s30 = scalar_lea.vmem %s1480_s20, 256 }
 0x212   : > { %p1078_p0 = scmp.ne.s32.totalorder %s1480_s20, %s1077_s30  ;;  %s1188_s29 = smov [#allocation12]  }
 0x213   : > { %s1081_s8 = sshll.u32 %s1188_s29, 4  ;;  %s1082_s8 = int_to_ptr.vmem [resolvable:$false] %s1081_s8 }
 0x214   : > { %p1079_p7 = pnand %p1078_p0, %p1601_p9  ;;  %s1083_s18 = scalar_lea.vmem %s1082_s8, 512 }
 0x215   : > { %p1084_p8 = scmp.lt.s32.totalorder %s1480_s20, %s1082_s8  ;;  %p1085_p1 = scmp.lt.s32.totalorder %s1083_s18, %s1077_s30 }
 0x216   : > { %p1080_p5 = pneg %p1079_p7 }
 0x217   : > { %p1086_p3 = por %p1085_p1, %p1084_p8 }
 0x219   : > { %p1087_p6 = pnand %p1086_p3, %p1080_p5 }
 0x21b   : > { %1090 = shalt.err (!%p1087_p6)
}
 0x21c   : > { %s1091_s14 = scalar_lea.hbm %s1492_s10, 256  ;;  %s1095_s12 = scalar_lea.hbm %s1580_s6, 512 }
 0x21d   : > { %p1092_p13 = scmp.ne.s32.totalorder %s1492_s10, %s1091_s14  ;;  %p1096_p2 = scmp.lt.u32.totalorder %s1492_s10, %s1580_s6 }
 0x21e   : > { %p1097_p10 = scmp.lt.u32.totalorder %s1095_s12, %s1091_s14  ;;  %p1099_p0 = scmp.lt.u32.totalorder %s1091_s14, %s1492_s10 }
 0x21f   : > { %p1093_p12 = pnand %p1092_p13, %p1601_p9 }
 0x220   : > { %p1098_p11 = por %p1097_p10, %p1096_p2 }
 0x221   : > { %p1094_p4 = pneg %p1093_p12 }
 0x222   : > { %p1100_p7 = por %p1099_p0, %p1098_p11 }
 0x224   : > { %p1101_p5 = pnand %p1100_p7, %p1094_p4 }
 0x226   : > { %1104 = shalt.err (!%p1101_p5)
}
 0x227   : > { %805 = dma.vmem_to_hbm [thread:$0]  (%p1601_p9), %s1480_s20, 256, %s1492_s10, %s531_s13, %s1186_s15, %s1186_s15, %s1187_s9  }
 0x228 PF: > { %s577_s30 = sand.u32 1, %s1151_s21   ;;  %p1602_p8 = scmp.ne.s32.totalorder %s1597_s19, 0 }
 0x229   : > { %p1603_p1 = scmp.ge.s32.totalorder %s1171_s26, 2  ;;  %s578_s29 = scalar_lea.sflag [#allocation4], %s577_s30 }
 0x22b   : > { %p826_p3 = pnand %p1603_p1, %p1602_p8 }
 0x22d   : > { %1142 = dma.done.wait (!%p826_p3), %s578_s29, 256  }
 0x22e   : > { %1144 = vsyncadd (!%p826_p3), %s578_s29, 4294967040  ;;  %s587_s16 = scalar_lea.sflag [#allocation13], %s577_s30 }
 0x22f   : > { %1146 = dma.done.wait (!%p826_p3), %s587_s16, 256  }
 0x230   : > { %1148 = vsyncadd (!%p826_p3), %s587_s16, 4294967040  ;;  %s28_s26 = sadd.s32 1, %s1171_s26   ;;  %s1604_s21 = smov %s1155_s22 }
 0x231   : > { %p25_p6 = scmp.ge.s32.totalorder %s28_s26, 4   ;;  %s1605_s22 = smov %s1159_s23 }
 0x232   : > { %s1606_s23 = smov %s1400_s17  ;;  %s1607_s24 = smov %s1167_s25 }
 0x233   : > { %s1608_s25 = smov %s1610_s11  ;;  %27 = sbr.rel (!%p25_p6) target bundleno = 12 (0xc), region = 124 }
 0x23a   :  { %592 = vsyncpa [#allocation3], 1 }
 0x23b   :  { %594 = vsyncpa [#allocation3 + $0x1], 1 }
 0x23c   :  { %595 = vsyncpa [#allocation6], 1 }
 0x23d   :  { %596 = vsyncpa [#allocation9], 1 }
 0x23e   :  { %597 = vsyncpa [#allocation4], 1 }
 0x23f   :  { %599 = vsyncpa [#allocation4 + $0x1], 1 }
 0x240   :  { %600 = vsyncpa [#allocation13], 1 }
 0x241   :  { %602 = vsyncpa [#allocation13 + $0x1], 1 }

</bundles_post_ra>
